<compile_context>
chip_gen: v7x
topology: tpu7x:2x2x1
jax: 0.10.0
libtpu: 0.0.40
codegen_flags: <defaults>
</compile_context>

<pallas_src>
import functools

import jax
import jax.numpy as jnp
from jax.experimental import pallas as pl
from jax.experimental.pallas import tpu as pltpu


_MAX_BLOCK_COLS = 2048           # lane-dim tile cap (multiple of 128)
_TARGET_TILE_ELEMS = 256 * 1024  # ~1 MiB f32 per input tile per pipeline buffer


def _round_up(n, m):
    return ((n + m - 1) // m) * m


def _largest_aligned_divisor(n, align, cap):
    """Largest d <= cap with d % align == 0 and n % d == 0 (n % align == 0)."""
    best = align
    d = align
    limit = min(n, cap)
    while d <= limit:
        if n % d == 0:
            best = d
        d += align
    return best


def _fold_tile_to_vreg(x):
    """Fold a (BR, BC) f32 tile into an (8, 128) partial-sum tile.

    Uses only a leading-(major)-dim reduce and lane-block-aligned slices, so
    everything stays on the VPU in the hot loop -- the cross-lane reduce is
    deferred to the wrapper.
    """
    br, bc = x.shape
    if br > 8:
        x = x.reshape(br // 8, 8, bc).sum(axis=0)      # vreg-wise adds -> (8, BC)
    out = x[:, 0:128]
    for k in range(1, bc // 128):                      # static unroll, <= 16 adds
        out = out + x[:, k * 128:(k + 1) * 128]
    return out                                         # (8, 128)


def _masked_mse_kernel(pred_ref, target_ref, mask_ref,
                       sq_out_ref, msum_out_ref,
                       acc_sq_ref, acc_m_ref):
    j = pl.program_id(1)

    @pl.when(j == 0)
    def _init():
        acc_sq_ref[...] = jnp.zeros_like(acc_sq_ref)
        acc_m_ref[...] = jnp.zeros_like(acc_m_ref)

    p = pred_ref[...].astype(jnp.float32)
    t = target_ref[...].astype(jnp.float32)
    m = mask_ref[...].astype(jnp.float32)

    d = p * m - t                            # target intentionally NOT masked
    acc_sq_ref[...] += _fold_tile_to_vreg(d * d)
    acc_m_ref[...] += _fold_tile_to_vreg(m)

    @pl.when(j == pl.num_programs(1) - 1)
    def _finalize():
        sq_out_ref[...] = acc_sq_ref[...]
        msum_out_ref[...] = acc_m_ref[...]


def masked_mse_loss(pred, target, mask, *, block_rows=None, block_cols=None):
    """pred, target, mask: (batch, seq_len). Returns scalar float32 loss.

    mask may be bool/int8/float; pred/target may be bf16 or f32 (accumulation
    is always f32). block_rows/block_cols override the auto tile choice and
    must be multiples of 8 / 128.
    """
    assert pred.shape == target.shape == mask.shape and pred.ndim == 2
    rows, cols = pred.shape

    # --- choose a VMEM-safe tile (<= ~1 MiB f32 per input per buffer) --------
    if block_cols is None:
        cols_aligned = _round_up(cols, 128)
        bc = _largest_aligned_divisor(cols_aligned, 128, _MAX_BLOCK_COLS)
    else:
        assert block_cols % 128 == 0
        bc = block_cols
    if block_rows is None:
        rows_aligned = _round_up(rows, 8)
        br_cap = max(8, _TARGET_TILE_ELEMS // bc)
        br = _largest_aligned_divisor(rows_aligned, 8, br_cap)
    else:
        assert block_rows % 8 == 0
        br = block_rows

    rows_p = _round_up(rows, br)
    cols_p = _round_up(cols, bc)
    if (rows_p, cols_p) != (rows, cols):
        pad = ((0, rows_p - rows), (0, cols_p - cols))
        # Zero padding contributes 0 to both sums (pred = mask = target = 0).
        pred = jnp.pad(pred, pad)
        target = jnp.pad(target, pad)
        mask = jnp.pad(mask, pad)

    grid_i = rows_p // br
    grid_j = cols_p // bc

    partial_shape = jax.ShapeDtypeStruct((grid_i * 8, 128), jnp.float32)
    in_block = pl.BlockSpec((br, bc), lambda i, j: (i, j))
    out_block = pl.BlockSpec((8, 128), lambda i, j: (i, 0))

    bytes_accessed = (pred.size * pred.dtype.itemsize
                      + target.size * target.dtype.itemsize
                      + mask.size * mask.dtype.itemsize
                      + 2 * grid_i * 8 * 128 * 4)

    sq_parts, m_parts = pl.pallas_call(
        _masked_mse_kernel,
        out_shape=(partial_shape, partial_shape),
        grid_spec=pltpu.PrefetchScalarGridSpec(
            num_scalar_prefetch=0,
            grid=(grid_i, grid_j),
            in_specs=[in_block, in_block, in_block],
            out_specs=(out_block, out_block),
            scratch_shapes=[pltpu.VMEM((8, 128), jnp.float32),
                            pltpu.VMEM((8, 128), jnp.float32)],
        ),
        compiler_params=pltpu.CompilerParams(
            dimension_semantics=("parallel", "arbitrary")),
        cost_estimate=pl.CostEstimate(
            flops=5 * rows_p * cols_p,
            transcendentals=0,
            bytes_accessed=bytes_accessed),
    )(pred, target, mask)

    # Tiny final reduce + divide in plain JAX: keeps the kernel free of
    # per-step scalar XLU reductions and lets row blocks run in parallel.
    return jnp.sum(sq_parts) / jnp.sum(m_parts)


if __name__ == "__main__":
    key = jax.random.PRNGKey(0)
    k1, k2, k3, k4, k5, k6 = jax.random.split(key, 6)

    # --- small case, matches the PyTorch module's (batch, seq_len) layout ----
    batch, seq_len = 2, 8
    pred = jax.random.normal(k1, (batch, seq_len), dtype=jnp.float32)
    target = jax.random.normal(k2, (batch, seq_len), dtype=jnp.float32)
    mask = (jax.random.uniform(k3, (batch, seq_len)) > 0.3).astype(jnp.float32)

    loss = jax.block_until_ready(jax.jit(masked_mse_loss)(pred, target, mask))
    ref = jnp.sum((pred * mask - target) ** 2) / jnp.sum(mask)
    assert jnp.allclose(loss, ref, rtol=1e-5, atol=1e-5), (loss, ref)

    # --- larger, non-aligned case exercising the multi-block accumulator grid
    # (bool mask -> 4x less mask HBM traffic; cast to f32 inside the kernel).
    b2, s2 = 24, 300
    pred2 = jax.random.normal(k4, (b2, s2), dtype=jnp.float32)
    target2 = jax.random.normal(k5, (b2, s2), dtype=jnp.float32)
    mask2_b = jax.random.uniform(k6, (b2, s2)) > 0.3

    tiled = jax.jit(functools.partial(masked_mse_loss,
                                      block_rows=8, block_cols=128))
    loss2 = jax.block_until_ready(tiled(pred2, target2, mask2_b))
    mask2_f = mask2_b.astype(jnp.float32)
    ref2 = jnp.sum((pred2 * mask2_f - target2) ** 2) / jnp.sum(mask2_f)
    assert jnp.allclose(loss2, ref2, rtol=1e-5, atol=1e-5), (loss2, ref2)

    print("KERNEL_OK")
</pallas_src>

<mosaic_0001>
module attributes {stable_mosaic.version = 11 : i64} {
  func.func @_masked_mse_kernel(%arg0: i32, %arg1: i32, %arg2: memref<8x128xf32, #tpu.memory_space<vmem>>, %arg3: memref<8x128xf32, #tpu.memory_space<vmem>>, %arg4: memref<8x128xf32, #tpu.memory_space<vmem>>, %arg5: memref<8x128xf32, #tpu.memory_space<vmem>>, %arg6: memref<8x128xf32, #tpu.memory_space<vmem>>, %arg7: memref<8x128xf32, #tpu.memory_space<vmem>>, %arg8: memref<8x128xf32, #tpu.memory_space<vmem>>) attributes {dimension_semantics = [#tpu.dimension_semantics<parallel>, #tpu.dimension_semantics<arbitrary>], iteration_bounds = array<i64: 1, 1>, scalar_prefetch = 0 : i64, scratch_operands = 2 : i64, tpu.core_type = #tpu.core_type<tc>, window_params = [{transform_indices = @transform_0, window_bounds = array<i64: 8, 128>}, {transform_indices = @transform_1, window_bounds = array<i64: 8, 128>}, {transform_indices = @transform_2, window_bounds = array<i64: 8, 128>}, {transform_indices = @transform_3, window_bounds = array<i64: 8, 128>}, {transform_indices = @transform_4, window_bounds = array<i64: 8, 128>}]} {
    %c0_i32 = arith.constant 0 : i32
    %0 = arith.cmpi eq, %arg1, %c0_i32 : i32
    %1 = arith.extui %0 : i1 to i32
    %c0_i32_0 = arith.constant 0 : i32
    %2 = arith.cmpi ne, %1, %c0_i32_0 : i32
    scf.if %2 {
      %cst = arith.constant 0.000000e+00 : f32
      %18 = vector.broadcast %cst : f32 to vector<8x128xf32>
      %c0_16 = arith.constant 0 : index
      %c0_17 = arith.constant 0 : index
      %19 = vector.load %arg7[%c0_16, %c0_17] : memref<8x128xf32, #tpu.memory_space<vmem>>, vector<8x128xf32>
      tpu.vector_store %arg7[%c0_16, %c0_17], %18 {strides = array<i32>} : memref<8x128xf32, #tpu.memory_space<vmem>>, vector<8x128xf32>,
      %cst_18 = arith.constant 0.000000e+00 : f32
      %20 = vector.broadcast %cst_18 : f32 to vector<8x128xf32>
      %c0_19 = arith.constant 0 : index
      %c0_20 = arith.constant 0 : index
      %21 = vector.load %arg8[%c0_19, %c0_20] : memref<8x128xf32, #tpu.memory_space<vmem>>, vector<8x128xf32>
      tpu.vector_store %arg8[%c0_19, %c0_20], %20 {strides = array<i32>} : memref<8x128xf32, #tpu.memory_space<vmem>>, vector<8x128xf32>,
    } else {
    }
    %c0 = arith.constant 0 : index
    %c0_1 = arith.constant 0 : index
    %3 = vector.load %arg2[%c0, %c0_1] : memref<8x128xf32, #tpu.memory_space<vmem>>, vector<8x128xf32>
    %c0_2 = arith.constant 0 : index
    %c0_3 = arith.constant 0 : index
    %4 = vector.load %arg3[%c0_2, %c0_3] : memref<8x128xf32, #tpu.memory_space<vmem>>, vector<8x128xf32>
    %c0_4 = arith.constant 0 : index
    %c0_5 = arith.constant 0 : index
    %5 = vector.load %arg4[%c0_4, %c0_5] : memref<8x128xf32, #tpu.memory_space<vmem>>, vector<8x128xf32>
    %6 = arith.mulf %3, %5 : vector<8x128xf32>
    %7 = arith.subf %6, %4 : vector<8x128xf32>
    %c0_6 = arith.constant 0 : index
    %c0_7 = arith.constant 0 : index
    %8 = vector.load %arg7[%c0_6, %c0_7] : memref<8x128xf32, #tpu.memory_space<vmem>>, vector<8x128xf32>
    %9 = arith.mulf %7, %7 : vector<8x128xf32>
    %10 = arith.addf %8, %9 : vector<8x128xf32>
    %c0_8 = arith.constant 0 : index
    %c0_9 = arith.constant 0 : index
    %11 = vector.load %arg7[%c0_8, %c0_9] : memref<8x128xf32, #tpu.memory_space<vmem>>, vector<8x128xf32>
    tpu.vector_store %arg7[%c0_8, %c0_9], %10 {strides = array<i32>} : memref<8x128xf32, #tpu.memory_space<vmem>>, vector<8x128xf32>,
    %c0_10 = arith.constant 0 : index
    %c0_11 = arith.constant 0 : index
    %12 = vector.load %arg8[%c0_10, %c0_11] : memref<8x128xf32, #tpu.memory_space<vmem>>, vector<8x128xf32>
    %13 = arith.addf %12, %5 : vector<8x128xf32>
    %c0_12 = arith.constant 0 : index
    %c0_13 = arith.constant 0 : index
    %14 = vector.load %arg8[%c0_12, %c0_13] : memref<8x128xf32, #tpu.memory_space<vmem>>, vector<8x128xf32>
    tpu.vector_store %arg8[%c0_12, %c0_13], %13 {strides = array<i32>} : memref<8x128xf32, #tpu.memory_space<vmem>>, vector<8x128xf32>,
    %c0_i32_14 = arith.constant 0 : i32
    %15 = arith.cmpi eq, %arg1, %c0_i32_14 : i32
    %16 = arith.extui %15 : i1 to i32
    %c0_i32_15 = arith.constant 0 : i32
    %17 = arith.cmpi ne, %16, %c0_i32_15 : i32
    scf.if %17 {
      %c0_16 = arith.constant 0 : index
      %c0_17 = arith.constant 0 : index
      %18 = vector.load %arg7[%c0_16, %c0_17] : memref<8x128xf32, #tpu.memory_space<vmem>>, vector<8x128xf32>
      %c0_18 = arith.constant 0 : index
      %c0_19 = arith.constant 0 : index
      %19 = vector.load %arg5[%c0_18, %c0_19] : memref<8x128xf32, #tpu.memory_space<vmem>>, vector<8x128xf32>
      tpu.vector_store %arg5[%c0_18, %c0_19], %18 {strides = array<i32>} : memref<8x128xf32, #tpu.memory_space<vmem>>, vector<8x128xf32>,
      %c0_20 = arith.constant 0 : index
      %c0_21 = arith.constant 0 : index
      %20 = vector.load %arg8[%c0_20, %c0_21] : memref<8x128xf32, #tpu.memory_space<vmem>>, vector<8x128xf32>
      %c0_22 = arith.constant 0 : index
      %c0_23 = arith.constant 0 : index
      %21 = vector.load %arg6[%c0_22, %c0_23] : memref<8x128xf32, #tpu.memory_space<vmem>>, vector<8x128xf32>
      tpu.vector_store %arg6[%c0_22, %c0_23], %20 {strides = array<i32>} : memref<8x128xf32, #tpu.memory_space<vmem>>, vector<8x128xf32>,
    } else {
    }
    return
  }
  func.func @transform_0(%arg0: i32, %arg1: i32) -> (i32, i32) {
    %c0_i32 = arith.constant 0 : i32
    return %arg0, %arg1 : i32, i32
  }
  func.func @transform_1(%arg0: i32, %arg1: i32) -> (i32, i32) {
    %c0_i32 = arith.constant 0 : i32
    return %arg0, %arg1 : i32, i32
  }
  func.func @transform_2(%arg0: i32, %arg1: i32) -> (i32, i32) {
    %c0_i32 = arith.constant 0 : i32
    return %arg0, %arg1 : i32, i32
  }
  func.func @transform_3(%arg0: i32, %arg1: i32) -> (i32, i32) {
    %c0_i32 = arith.constant 0 : i32
    %c0_i32_0 = arith.constant 0 : i32
    return %arg0, %c0_i32 : i32, i32
  }
  func.func @transform_4(%arg0: i32, %arg1: i32) -> (i32, i32) {
    %c0_i32 = arith.constant 0 : i32
    %c0_i32_0 = arith.constant 0 : i32
    return %arg0, %c0_i32 : i32, i32
  }
}

</mosaic_0001>

<bundles_post_ra>
// kernel: masked_mse_loss.1
= control target key start
LH: loop header
LB: loop body
LE: loop exit
PB: predicated region body
PF: predicated region fallthrough
CT: control target
= control target key end

     0   :  { %s89_s0 = inlined_call_operand.vmem [shape: f32[8,128], index: 0, kind: input, shape index: {}]   ;;  %s90_s1 = inlined_call_operand.vmem [shape: f32[8,128], index: 1, kind: input, shape index: {}]   ;;  %s91_s2 = inlined_call_operand.vmem [shape: f32[8,128], index: 2, kind: input, shape index: {}]   ;;  %s92_s4 = inlined_call_operand.vmem [shape: f32[8,128], index: 4, kind: output, shape index: {1}]   ;;  %s93_s3 = inlined_call_operand.vmem [shape: f32[8,128], index: 3, kind: output, shape index: {0}]  }
   0x1   :  { %v22_v0 = vld [vmem:[%s89_s0] sm:$0xff] }
   0x2   :  { %v23_v1 = vld [vmem:[%s90_s1] sm:$0xff] }
   0x3   :  { %v24_v2 = vld [vmem:[%s91_s2] sm:$0xff] }
   0x4   :  { %v25_v3 = vmul.f32 %v24_v2, %v22_v0  ;;  %40 = vst [vmem:[%s92_s4] sm:$0xff] %v24_v2 }
   0x6   :  { %v26_v4 = vsub.f32 %v25_v3, %v23_v1 }
   0x8   :  { %v28_v5 = vmul.f32 %v26_v4, %v26_v4 }
   0xa   :  { %38 = vst [vmem:[%s93_s3] sm:$0xff] %v28_v5 }

</bundles_post_ra>
